<compile_context>
chip_gen: v5e
topology: v5e:2x2
jax: 0.10.0
libtpu: 0.0.40
codegen_flags: <defaults>
</compile_context>

<pallas_src>
import functools
import math

import jax
import jax.numpy as jnp
from jax.experimental import pallas as pl
from jax.experimental.pallas import tpu as pltpu


def _fold(a, rh, cw):
    """Fold (R, C) -> (rh, cw) with aligned-slice elementwise adds (no cross-lane reduce)."""
    r, c = a.shape
    if c > cw:
        acc = a[:, 0:cw]
        for g in range(1, c // cw):
            acc = acc + a[:, g * cw:(g + 1) * cw]
        a = acc
    if r > rh:
        acc = a[0:rh, :]
        for g in range(1, r // rh):
            acc = acc + a[g * rh:(g + 1) * rh, :]
        a = acc
    return a


def _label_smoothing_kernel(x_ref, tgt_ref, out_ref, *,
                            n_rows, n_cols, padding_idx,
                            neg_conf, neg_smooth, c_row,
                            tn, tv, rh, cw,
                            need_row_mask, need_col_mask):
    j = pl.program_id(1)

    x = x_ref[...].astype(jnp.float32)          # (tn, tv)
    tgt = tgt_ref[...]                          # (tn, 1) int32

    # Global class index for this tile.
    col = jax.lax.broadcasted_iota(jnp.int32, (tn, tv), 1) + j * tv

    # Rows that contribute: real rows whose target is not the padding index.
    row_ok = tgt != padding_idx                 # (tn, 1)
    if need_row_mask:
        i = pl.program_id(0)
        row_ids = jax.lax.broadcasted_iota(jnp.int32, (tn, 1), 0) + i * tn
        row_ok = row_ok & (row_ids < n_rows)

    # Elements forced to zero weight: invalid rows, the padding column, padded lanes.
    zero = jnp.logical_not(row_ok)              # (tn, 1) -> broadcasts
    zero = zero | (col == padding_idx)
    if need_col_mask:
        zero = zero | (col >= n_cols)

    # -true_dist (negated constants baked in; no log, no extra negate).
    w = jnp.where(col == tgt, jnp.float32(neg_conf), jnp.float32(neg_smooth))
    contrib = jnp.where(zero, jnp.float32(0.0), w * x)     # = -td * x

    part = _fold(contrib, rh, cw)               # (rh, cw)

    @pl.when(j == 0)
    def _init():
        # Seed the accumulator with the per-row constant sum(td*log(td)) = C_row per valid row.
        c_part = jnp.float32(c_row) * jnp.sum(row_ok.astype(jnp.float32))
        ri = jax.lax.broadcasted_iota(jnp.int32, (rh, cw), 0)
        ci = jax.lax.broadcasted_iota(jnp.int32, (rh, cw), 1)
        out_ref[...] = jnp.where((ri == 0) & (ci == 0), c_part, jnp.float32(0.0))

    out_ref[...] += part


def _choose_tiles(n, v, itemsize, block_rows=None, block_cols=None):
    # Class (lane) tile: full V if small, else a multiple of 128 (<= 2048).
    if v <= 128:
        tv = v
    else:
        v_pad = ((v + 127) // 128) * 128
        tv = min(2048, v_pad) if block_cols is None \
            else min(((block_cols + 127) // 128) * 128, v_pad)
        tv = max(tv, 128)
    # Row (sublane) tile: ~4 MiB of x per buffer, multiple of 8.
    if n < 8:
        tn = n
    else:
        n_pad = ((n + 7) // 8) * 8
        if block_rows is None:
            target_bytes = 4 << 20
            tn = max(8, min(1024, (target_bytes // max(tv * itemsize, 1)) // 8 * 8))
        else:
            tn = max(8, ((block_rows + 7) // 8) * 8)
        tn = min(tn, n_pad)
    return tn, tv


def label_smoothing_loss(x, target, *, size, padding_idx, smoothing,
                         block_rows=None, block_cols=None):
    """x: (N, size) log-probs (any float dtype); target: (N,) ints. Returns scalar f32 loss."""
    n, v = x.shape
    assert v == size, "x.shape[1] must equal size"
    if smoothing != 0.0:
        assert size > 2, "smoothing/(size-2) requires size > 2"

    confidence = 1.0 - smoothing
    smooth_val = (smoothing / (size - 2)) if size > 2 else 0.0
    # sum over nonzero entries of td*log(td) for one non-padding row (trace-time constant).
    c_row = 0.0
    if smooth_val > 0.0:
        c_row += (size - 2) * smooth_val * math.log(smooth_val)
    if confidence > 0.0:
        c_row += confidence * math.log(confidence)

    tgt2d = target.astype(jnp.int32).reshape(n, 1)

    itemsize = jnp.dtype(x.dtype).itemsize
    tn, tv = _choose_tiles(n, v, itemsize, block_rows, block_cols)
    rh = min(tn, 8)
    cw = min(tv, 128)
    gi = pl.cdiv(n, tn)
    gj = pl.cdiv(v, tv)
    need_row_mask = (n % tn) != 0
    need_col_mask = (gj * tv) > v

    kernel = functools.partial(
        _label_smoothing_kernel,
        n_rows=n, n_cols=v, padding_idx=int(padding_idx),
        neg_conf=-confidence, neg_smooth=-smooth_val, c_row=c_row,
        tn=tn, tv=tv, rh=rh, cw=cw,
        need_row_mask=need_row_mask, need_col_mask=need_col_mask,
    )

    # VMEM budget: double-buffered x tile + lane-padded target tile + resident out block.
    x_blk = tn * tv * itemsize
    tgt_blk = tn * 128 * 4
    out_blk = rh * 128 * 4
    vmem_limit = int(min(max(2 * (x_blk + tgt_blk + out_blk) + (4 << 20), 16 << 20), 48 << 20))

    partials = pl.pallas_call(
        kernel,
        out_shape=jax.ShapeDtypeStruct((gi * rh, cw), jnp.float32),
        grid=(gi, gj),
        in_specs=[
            pl.BlockSpec((tn, tv), lambda i, j: (i, j)),   # x tile
            pl.BlockSpec((tn, 1), lambda i, j: (i, 0)),    # target rows for this tile
        ],
        out_specs=pl.BlockSpec((rh, cw), lambda i, j: (i, 0)),  # per-row-tile partials
        compiler_params=pltpu.CompilerParams(
            dimension_semantics=("parallel", "arbitrary"),
            vmem_limit_bytes=vmem_limit,
        ),
    )(x, tgt2d)

    # Single final reduction of the tiny lane-dense partial-sum array.
    return jnp.sum(partials)


def _reference_loss(x, target, *, size, padding_idx, smoothing):
    """Plain-JAX reference mirroring the PyTorch forward."""
    x = x.astype(jnp.float32)
    n, v = x.shape
    confidence = 1.0 - smoothing
    sv = (smoothing / (size - 2)) if size > 2 else 0.0
    col = jnp.arange(v)[None, :]
    tgt = target.astype(jnp.int32)[:, None]
    td = jnp.full((n, v), sv, jnp.float32)
    td = jnp.where(col == tgt, confidence, td)
    td = jnp.where(col == padding_idx, 0.0, td)
    td = jnp.where(tgt == padding_idx, 0.0, td)
    pos = td > 0
    kl = jnp.where(pos, td * (jnp.log(jnp.where(pos, td, 1.0)) - x), 0.0)
    return jnp.sum(kl)


def _make_case(key, n, size, padding_idx):
    k_logits, k_tgt = jax.random.split(key)
    logits = jax.random.normal(k_logits, (n, size), dtype=jnp.float32)
    x = jax.nn.log_softmax(logits, axis=-1)
    target = jax.random.randint(k_tgt, (n,), 0, size, dtype=jnp.int32)
    target = target.at[1].set(padding_idx)   # ensure at least one padded row
    return x, target


if __name__ == "__main__":
    key = jax.random.PRNGKey(0)
    k1, k2, k3 = jax.random.split(key, 3)

    # Case 1: small shapes consistent with the module (single tile).
    x1, t1 = _make_case(k1, 8, 32, 0)
    loss1 = jax.block_until_ready(
        label_smoothing_loss(x1, t1, size=32, padding_idx=0, smoothing=0.1))
    ref1 = _reference_loss(x1, t1, size=32, padding_idx=0, smoothing=0.1)
    assert jnp.allclose(loss1, ref1, rtol=1e-5, atol=1e-4), (loss1, ref1)

    # Case 2: exercises row/column edge masking and the class-axis reduction grid.
    x2, t2 = _make_case(k2, 20, 160, 3)
    loss2 = jax.block_until_ready(
        label_smoothing_loss(x2, t2, size=160, padding_idx=3, smoothing=0.2,
                             block_rows=8, block_cols=128))
    ref2 = _reference_loss(x2, t2, size=160, padding_idx=3, smoothing=0.2)
    assert jnp.allclose(loss2, ref2, rtol=1e-5, atol=1e-3), (loss2, ref2)

    # Case 3: exercises multi-tile grid in both axes plus the tile->vreg fold path.
    x3, t3 = _make_case(k3, 40, 384, 0)
    loss3 = jax.block_until_ready(
        label_smoothing_loss(x3, t3, size=384, padding_idx=0, smoothing=0.1,
                             block_rows=16, block_cols=256))
    ref3 = _reference_loss(x3, t3, size=384, padding_idx=0, smoothing=0.1)
    assert jnp.allclose(loss3, ref3, rtol=1e-5, atol=1e-3), (loss3, ref3)

    print("KERNEL_OK")
</pallas_src>

<mosaic_0001>
module attributes {stable_mosaic.version = 11 : i64} {
  func.func @_label_smoothing_kernel(%arg0: i32, %arg1: i32, %arg2: memref<8x32xf32, #tpu.memory_space<vmem>>, %arg3: memref<8x1xi32, #tpu.memory_space<vmem>>, %arg4: memref<8x32xf32, #tpu.memory_space<vmem>>) attributes {dimension_semantics = [#tpu.dimension_semantics<parallel>, #tpu.dimension_semantics<arbitrary>], iteration_bounds = array<i64: 1, 1>, scalar_prefetch = 0 : i64, scratch_operands = 0 : i64, tpu.core_type = #tpu.core_type<tc>, window_params = [{transform_indices = @transform_0, window_bounds = array<i64: 8, 32>}, {transform_indices = @transform_1, window_bounds = array<i64: 8, 1>}, {transform_indices = @transform_2, window_bounds = array<i64: 8, 32>}]} {
    %c0 = arith.constant 0 : index
    %c0_0 = arith.constant 0 : index
    %0 = vector.load %arg2[%c0, %c0_0] : memref<8x32xf32, #tpu.memory_space<vmem>>, vector<8x32xf32>
    %c0_1 = arith.constant 0 : index
    %c0_2 = arith.constant 0 : index
    %1 = vector.load %arg3[%c0_1, %c0_2] : memref<8x1xi32, #tpu.memory_space<vmem>>, vector<8x1xi32>
    %2 = tpu.iota {dimensions = array<i32: 1>} : vector<8x32xi32>
    %c32_i32 = arith.constant 32 : i32
    %3 = arith.muli %arg1, %c32_i32 : i32
    %4 = vector.broadcast %3 : i32 to vector<8x32xi32>
    %5 = arith.addi %2, %4 : vector<8x32xi32>
    %c0_i32 = arith.constant 0 : i32
    %6 = vector.broadcast %c0_i32 : i32 to vector<8x1xi32>
    %7 = arith.cmpi ne, %1, %6 : vector<8x1xi32>
    %cst = arith.constant dense<true> : vector<8x1xi1>
    %8 = arith.xori %7, %cst : vector<8x1xi1>
    %c0_i32_3 = arith.constant 0 : i32
    %9 = vector.broadcast %c0_i32_3 : i32 to vector<8x32xi32>
    %10 = arith.cmpi eq, %5, %9 : vector<8x32xi32>
    %11 = vector.broadcast %8 : vector<8x1xi1> to vector<8x32xi1>
    %12 = arith.ori %11, %10 : vector<8x32xi1>
    %13 = vector.broadcast %1 : vector<8x1xi32> to vector<8x32xi32>
    %14 = arith.cmpi eq, %5, %13 : vector<8x32xi32>
    %cst_4 = arith.constant -0.899999976 : f32
    %cst_5 = arith.constant -0.00333333341 : f32
    %15 = vector.broadcast %cst_4 : f32 to vector<8x32xf32>
    %16 = vector.broadcast %cst_5 : f32 to vector<8x32xf32>
    %17 = arith.select %14, %15, %16 : vector<8x32xi1>, vector<8x32xf32>
    %18 = arith.mulf %17, %0 : vector<8x32xf32>
    %cst_6 = arith.constant 0.000000e+00 : f32
    %19 = vector.broadcast %cst_6 : f32 to vector<8x32xf32>
    %20 = arith.select %12, %19, %18 : vector<8x32xi1>, vector<8x32xf32>
    %c0_i32_7 = arith.constant 0 : i32
    %21 = arith.cmpi eq, %arg1, %c0_i32_7 : i32
    %22 = arith.extui %21 : i1 to i32
    %c0_i32_8 = arith.constant 0 : i32
    %23 = arith.cmpi ne, %22, %c0_i32_8 : i32
    scf.if %23 {
      %27 = arith.extui %7 : vector<8x1xi1> to vector<8x1xi32>
      %28 = arith.sitofp %27 : vector<8x1xi32> to vector<8x1xf32>
      %29 = vector.shape_cast %28 : vector<8x1xf32> to vector<1x8x1xf32>
      %cst_13 = arith.constant dense<0.000000e+00> : vector<1xf32>
      %30 = vector.multi_reduction <add>, %29, %cst_13 [1, 2] : vector<1x8x1xf32> to vector<1xf32>
      %31 = vector.shape_cast %30 : vector<1xf32> to vector<1x1x1xf32>
      %32 = vector.extract %31[0, 0, 0] : f32 from vector<1x1x1xf32>
      %cst_14 = arith.constant -0.665202737 : f32
      %33 = arith.mulf %cst_14, %32 : f32
      %34 = tpu.iota {dimensions = array<i32: 0>} : vector<8x32xi32>
      %35 = tpu.iota {dimensions = array<i32: 1>} : vector<8x32xi32>
      %c0_i32_15 = arith.constant 0 : i32
      %36 = vector.broadcast %c0_i32_15 : i32 to vector<8x32xi32>
      %37 = arith.cmpi eq, %34, %36 : vector<8x32xi32>
      %c0_i32_16 = arith.constant 0 : i32
      %38 = vector.broadcast %c0_i32_16 : i32 to vector<8x32xi32>
      %39 = arith.cmpi eq, %35, %38 : vector<8x32xi32>
      %40 = arith.andi %37, %39 : vector<8x32xi1>
      %cst_17 = arith.constant 0.000000e+00 : f32
      %41 = vector.broadcast %33 : f32 to vector<8x32xf32>
      %42 = vector.broadcast %cst_17 : f32 to vector<8x32xf32>
      %43 = arith.select %40, %41, %42 : vector<8x32xi1>, vector<8x32xf32>
      %c0_18 = arith.constant 0 : index
      %c0_19 = arith.constant 0 : index
      %44 = vector.load %arg4[%c0_18, %c0_19] : memref<8x32xf32, #tpu.memory_space<vmem>>, vector<8x32xf32>
      tpu.vector_store %arg4[%c0_18, %c0_19], %43 {strides = array<i32>} : memref<8x32xf32, #tpu.memory_space<vmem>>, vector<8x32xf32>,
    } else {
    }
    %c0_9 = arith.constant 0 : index
    %c0_10 = arith.constant 0 : index
    %24 = vector.load %arg4[%c0_9, %c0_10] : memref<8x32xf32, #tpu.memory_space<vmem>>, vector<8x32xf32>
    %25 = arith.addf %24, %20 : vector<8x32xf32>
    %c0_11 = arith.constant 0 : index
    %c0_12 = arith.constant 0 : index
    %26 = vector.load %arg4[%c0_11, %c0_12] : memref<8x32xf32, #tpu.memory_space<vmem>>, vector<8x32xf32>
    tpu.vector_store %arg4[%c0_11, %c0_12], %25 {strides = array<i32>} : memref<8x32xf32, #tpu.memory_space<vmem>>, vector<8x32xf32>,
    return
  }
  func.func @transform_0(%arg0: i32, %arg1: i32) -> (i32, i32) {
    %c0_i32 = arith.constant 0 : i32
    return %arg0, %arg1 : i32, i32
  }
  func.func @transform_1(%arg0: i32, %arg1: i32) -> (i32, i32) {
    %c0_i32 = arith.constant 0 : i32
    %c0_i32_0 = arith.constant 0 : i32
    return %arg0, %c0_i32 : i32, i32
  }
  func.func @transform_2(%arg0: i32, %arg1: i32) -> (i32, i32) {
    %c0_i32 = arith.constant 0 : i32
    %c0_i32_0 = arith.constant 0 : i32
    return %arg0, %c0_i32 : i32, i32
  }
}

</mosaic_0001>

<bundles_post_ra>
// kernel: tpu_custom_call.1
= control target key start
LH: loop header
LB: loop body
LE: loop exit
PB: predicated region body
PF: predicated region fallthrough
CT: control target
= control target key end

     0   :  { %vm41_vm0 = vcmask 7168   ;;  %v118_v1 = vmov 0   ;;  %s151_s0 = inlined_call_operand.vmem [shape: f32[8,32], index: 0, kind: input, shape index: {}]   ;;  %s152_s1 = inlined_call_operand.vmem [shape: s32[8,1], index: 1, kind: input, shape index: {}]   ;;  %s153_s2 = inlined_call_operand.hbm [shape: f32[8,32], index: 2, kind: output, shape index: {}]  }
   0x1   :  { %v13_v0 = vld [vmem:[%s152_s1] sm:$0xff]  ;;  %90 = vset.pattern.permute.xlu0 %v118_v1  ;;  %91 = vset.pattern.permute.xlu1 %v118_v1 }
   0x2   :  { %vm19_vm1 = vcmp.ne.s32.totalorder %v13_v0, 0 }
   0x3   :  { %7 = vsyncpa [#allocation3], 0  ;;  %v119_v2 = vmov 0.0   ;;  %vm120_vm2 = vmmov 1   ;;  %v14_v13 = vlaneseq  ;;  %vm60_vm8 = vcmask 261120   ;;  %v12_v19 = vld [vmem:[%s151_s0] sm:$0xff] }
   0x4   :  { %v82_v3 = vsel %vm19_vm1, 1.0, %v119_v2  ;;  %vm20_vm3 = vmxor %vm19_vm1, %vm120_vm2  ;;  %v121_v20 = vmov -0.0033333334   ;;  %s122_s14 = smov [#allocation2]   ;;  %s73_s18 = sshll.u32 %s153_s2, 4  ;;  %s74_s18 = int_to_ptr.hbm [resolvable:$true] %s73_s18 }
   0x5   :  { %v42_v4 = vsel %vm41_vm0, %v82_v3, 0.0  ;;  %v22_v5 = vsel %vm20_vm3, 1, %v118_v1  ;;  %v15_v14 = vand.u32 127, %v14_v13  ;;  %v54_v15 = vshrl.u32 %v14_v13, 7  ;;  %s71_s15 = sshll.u32 %s122_s14, 4  ;;  %s72_s15 = int_to_ptr.vmem [resolvable:$true] %s71_s15 }
   0x6   :  { %43 = vadd.xlane.f32.xlu0 %v42_v4  ;;  %24 = vperm.xlu1 %91, %v22_v5  }
   0x7   :  { %vm21_vm4 = vcmp.eq.s32.totalorder %v15_v14, 0  ;;  %vm55_vm5 = vcmp.eq.s32.totalorder %v54_v15, 0 }
   0x8   :  { %vm57_vm7 = vmand %vm55_vm5, %vm21_vm4 }
  0x1a   :  { %29 = vperm.xlu0 %90, %v13_v0  }
  0x78   :  { %v25_v17 = vpop.permute.xlu1 %24 }
  0x79   :  { %v44_v6 = vpop.xlane.xlu0 %43  ;;  %vm26_vm9 = vcmp.eq.s32.totalorder %v25_v17, 1 }
  0x7a   :  { %v45_v7 = vrot.slane %v44_v6, 4  ;;  %vm27_vm10 = vmor %vm26_vm9, %vm21_vm4 }
  0x7c   :  { %v46_v8 = vadd.f32 %v45_v7, %v44_v6 }
  0x7e   :  { %v47_v9 = vrot.slane %v46_v8, 2 }
  0x80   :  { %v48_v10 = vadd.f32 %v47_v9, %v46_v8 }
  0x82   :  { %v49_v11 = vrot.slane %v48_v10, 1 }
  0x84   :  { %v50_v12 = vadd.f32 %v49_v11, %v48_v10 }
  0x86   :  { %83 = vpush %v50_v12 }
  0x8c   :  { %v30_v16 = vpop.permute.xlu0 %29 }
  0x8d   :  { %vm31_vm6 = vcmp.eq.s32.totalorder %v15_v14, %v30_v16 }
  0x8e   :  { %v32_v21 = vsel %vm31_vm6, -0.9, %v121_v20 }
  0x8f   :  { %v33_v23 = vmul.f32 %v32_v21, %v12_v19 }
  0x91   :  { %v34_v24 = vsel %vm27_vm10, 0.0, %v33_v23 }
  0xb7   :  { %s84_s1 = spop %83 }
  0xb8   :  { %s52_s11 = smul.f32 -0.66520274, %s84_s1 }
  0xba   :  { %v58_v18 = vstv %s52_s11 }
  0xbb   :  { %v59_v22 = vsel %vm57_vm7, %v58_v18, 0.0 }
  0xbc   :  { %61 = vst.msk [vmem:[#allocation2] sm:$0xff] %vm60_vm8, %v59_v22 }
  0xc3   :  { %v62_v25 = vld [vmem:[#allocation2] sm:$0xff] }
  0xc4   :  { %v63_v26 = vadd.f32 %v62_v25, %v34_v24 }
  0xc6   :  { %65 = vst.msk [vmem:[#allocation2] sm:$0xff] %vm60_vm8, %v63_v26 }
  0xc7   :  { %76 = dma.vmem_to_hbm [thread:$0]  %s72_s15, 128, %s74_s18, [#allocation3]  }
  0xc8   :  { %116 = dma.done.wait [#allocation3], 128  }
  0xc9   :  { %117 = vsyncadd [#allocation3], 4294967168 }
  0xca   :  { %81 = vsyncpa [#allocation3], 1 }

</bundles_post_ra>
